<compile_context>
chip_gen: v7x
topology: tpu7x:2x2x1
jax: 0.10.0
libtpu: 0.0.40
codegen_flags: <defaults>
</compile_context>

<pallas_src>
import jax
import jax.numpy as jnp
from jax.experimental import pallas as pl
from jax.experimental.pallas import tpu as pltpu

EPS = 1e-5  # torch.nn.LayerNorm default

# Per-block VMEM budget: ~2 MiB blocks => double-buffered in+out stays well
# under the 16 MiB (v5e) / 32 MiB (v6e, v7x) scoped-VMEM defaults while tiles
# are large enough (>=1-2 MiB) to sit on the HBM roofline.
_MAX_BLOCK_BYTES = 2 * 1024 * 1024


def _gelu_tanh(x):
    # Matches the reference GELU module exactly (tanh approximation).
    return 0.5 * x * (1.0 + jnp.tanh(0.7978845608 * (x + 0.044715 * x * x * x)))


def _pick_tile_hw(hw, c, itemsize, max_block_bytes=_MAX_BLOCK_BYTES):
    """Largest lane tile (last dim) for a (1, C, tile_hw) block.

    Returns either the full spatial extent (always legal) or a multiple of 128
    (lane-dense, unmasked stores), preferring one that divides H*W exactly.
    """
    if c * hw * itemsize <= max_block_bytes or hw <= 128:
        return hw
    budget_lanes = max(128, (max_block_bytes // (c * itemsize)) // 128 * 128)
    for cand in range(budget_lanes, 0, -128):
        if hw % cand == 0:
            return cand
    return budget_lanes  # tail block handled by Pallas masking


# -----------------------------------------------------------------------------
# FCEmb: t -> (B, C) time embedding.  Tiny, single-shot kernel (whole arrays in
# VMEM).  The second Linear is computed as an exact-f32 broadcast+reduce so the
# result is not subject to MXU bf16-pass rounding.
# -----------------------------------------------------------------------------
def _fc_emb_kernel(t_ref, w1_ref, b1_ref, w2t_ref, b2_ref, o_ref):
    t = t_ref[...].astype(jnp.float32)                 # (B, 1)
    h = t * w1_ref[...] + b1_ref[...]                  # (B,1)*(1,C)+(1,C) -> (B,C)
    h = _gelu_tanh(h)
    # out[b, j] = sum_c h[b, c] * w2t[c, j]            (w2t = w2.T)
    out = jnp.sum(h[:, :, None] * w2t_ref[...][None, :, :], axis=1) + b2_ref[...]
    o_ref[...] = out.astype(o_ref.dtype)


def fc_emb(t, w1, b1, w2, b2):
    """t: (B,); w1: (C,1), b1: (C,), w2: (C,C), b2: (C,) (torch layouts)."""
    B = t.shape[0]
    C = w1.shape[0]
    t2 = t.reshape(B, 1).astype(jnp.float32)
    w1t = w1.reshape(C).astype(jnp.float32)[None, :]        # (1, C)
    b1r = b1.astype(jnp.float32)[None, :]                   # (1, C)
    w2t = jnp.transpose(w2).astype(jnp.float32)             # (C, C)
    b2r = b2.astype(jnp.float32)[None, :]                   # (1, C)
    return pl.pallas_call(
        _fc_emb_kernel,
        out_shape=jax.ShapeDtypeStruct((B, C), jnp.float32),
    )(t2, w1t, b1r, w2t, b2r)


# -----------------------------------------------------------------------------
# Broadcast add: x (B, C, H*W) + t1 (B, C, 1), directly in NCHW layout.
# H*W is the lane axis -> lane-dense, unmasked stores; no transposes, no pad.
# -----------------------------------------------------------------------------
def _add_temb_kernel(x_ref, t_ref, o_ref):
    o_ref[...] = (x_ref[...].astype(jnp.float32) + t_ref[...]).astype(o_ref.dtype)


def block_forward(x, t, w1, b1, w2, b2, *, max_block_bytes=_MAX_BLOCK_BYTES):
    """Block.forward with attn=False, res=False (any `layer` count)."""
    B, C, H, W = x.shape
    HW = H * W
    t1 = fc_emb(t, w1, b1, w2, b2)                 # (B, C) f32
    t1_3 = t1.reshape(B, C, 1)
    x3 = x.reshape(B, C, HW)                       # contiguous view, no data movement

    tile_hw = _pick_tile_hw(HW, C, x.dtype.itemsize, max_block_bytes)
    grid = (B, pl.cdiv(HW, tile_hw))

    out3 = pl.pallas_call(
        _add_temb_kernel,
        out_shape=jax.ShapeDtypeStruct((B, C, HW), x.dtype),
        grid_spec=pltpu.PrefetchScalarGridSpec(
            num_scalar_prefetch=0,
            grid=grid,
            in_specs=[
                pl.BlockSpec((1, C, tile_hw), lambda b, s: (b, 0, s)),
                pl.BlockSpec((1, C, 1), lambda b, s: (b, 0, 0)),
            ],
            out_specs=pl.BlockSpec((1, C, tile_hw), lambda b, s: (b, 0, s)),
        ),
        compiler_params=pltpu.CompilerParams(
            dimension_semantics=("parallel", "parallel")
        ),
    )(x3, t1_3)
    return out3.reshape(B, C, H, W)


# -----------------------------------------------------------------------------
# ScaleOnlyLayerNorm, improved per review: work directly on NCHW viewed as
# (B, C, H*W); reduce over C on the sublane axis; scale broadcast as (1, C, 1);
# no transposes, no jnp.pad; large lane-dense tiles; parallel grid axes.
# -----------------------------------------------------------------------------
def _scale_only_ln_kernel(x_ref, scale_ref, o_ref):
    # x_ref: (1, C, tile_hw), scale_ref: (1, C, 1) f32, o_ref: (1, C, tile_hw)
    x = x_ref[...].astype(jnp.float32)
    mean = jnp.mean(x, axis=1, keepdims=True)                  # reduce over C
    centered = x - mean
    var = jnp.mean(centered * centered, axis=1, keepdims=True)  # biased var
    y = centered * jax.lax.rsqrt(var + EPS)
    o_ref[...] = (y * scale_ref[...]).astype(o_ref.dtype)


def scale_only_layer_norm(x_nchw, scale, *, max_block_bytes=_MAX_BLOCK_BYTES):
    """x_nchw: (B, C, H, W); scale: (C,). Returns (B, C, H, W)."""
    B, C, H, W = x_nchw.shape
    HW = H * W
    x3 = x_nchw.reshape(B, C, HW)
    scale3 = scale.astype(jnp.float32).reshape(1, C, 1)  # cast once in wrapper

    tile_hw = _pick_tile_hw(HW, C, x_nchw.dtype.itemsize, max_block_bytes)
    grid = (B, pl.cdiv(HW, tile_hw))

    out3 = pl.pallas_call(
        _scale_only_ln_kernel,
        out_shape=jax.ShapeDtypeStruct((B, C, HW), x_nchw.dtype),
        grid_spec=pltpu.PrefetchScalarGridSpec(
            num_scalar_prefetch=0,
            grid=grid,
            in_specs=[
                pl.BlockSpec((1, C, tile_hw), lambda b, s: (b, 0, s)),
                pl.BlockSpec((1, C, 1), lambda b, s: (0, 0, 0)),
            ],
            out_specs=pl.BlockSpec((1, C, tile_hw), lambda b, s: (b, 0, s)),
        ),
        compiler_params=pltpu.CompilerParams(
            dimension_semantics=("parallel", "parallel")
        ),
    )(x3, scale3)
    return out3.reshape(B, C, H, W)


# -----------------------------------------------------------------------------
# Pure-JAX references
# -----------------------------------------------------------------------------
def _block_forward_ref(x, t, w1, b1, w2, b2):
    h = t[:, None] * w1.reshape(-1)[None, :] + b1[None, :]     # (B, C)
    h = _gelu_tanh(h)
    t1 = jnp.sum(h[:, :, None] * jnp.transpose(w2)[None, :, :], axis=1) + b2[None, :]
    return x + t1[:, :, None, None]


def _scale_only_ln_ref(x, scale):
    mean = jnp.mean(x, axis=1, keepdims=True)
    var = jnp.mean((x - mean) ** 2, axis=1, keepdims=True)
    return (x - mean) / jnp.sqrt(var + EPS) * scale[None, :, None, None]


if __name__ == "__main__":
    key = jax.random.PRNGKey(0)
    k_x, k_t, k_w1, k_b1, k_w2, k_b2 = jax.random.split(key, 6)

    B, C, H, W = 2, 4, 16, 16
    x = jax.random.normal(k_x, (B, C, H, W), dtype=jnp.float32)
    t = jax.random.normal(k_t, (B,), dtype=jnp.float32)

    # Deterministic FCEmb parameters (torch layouts: Linear(1,C), Linear(C,C)).
    w1 = jax.random.normal(k_w1, (C, 1), dtype=jnp.float32) * 0.5
    b1 = jax.random.normal(k_b1, (C,), dtype=jnp.float32) * 0.1
    w2 = jax.random.normal(k_w2, (C, C), dtype=jnp.float32) * 0.5
    b2 = jax.random.normal(k_b2, (C,), dtype=jnp.float32) * 0.1

    # ScaleOnlyLayerNorm parameter, matching nn.Parameter(torch.ones(dim)).
    scale = jnp.ones((C,), dtype=jnp.float32)

    # Block forward (default attn=False, res=False): FCEmb + broadcast add.
    out = jax.block_until_ready(block_forward(x, t, w1, b1, w2, b2))
    ref = _block_forward_ref(x, t, w1, b1, w2, b2)
    assert out.shape == (B, C, H, W)
    assert jnp.allclose(out, ref, atol=1e-5, rtol=1e-5), float(
        jnp.max(jnp.abs(out - ref))
    )

    # Improved ScaleOnlyLayerNorm (pre_norm of the attn path), sanity-checked.
    ln = jax.block_until_ready(scale_only_layer_norm(x, scale))
    ln_ref = _scale_only_ln_ref(x, scale)
    assert ln.shape == (B, C, H, W)
    assert jnp.allclose(ln, ln_ref, atol=1e-5, rtol=1e-5), float(
        jnp.max(jnp.abs(ln - ln_ref))
    )

    print("KERNEL_OK")
</pallas_src>

<mosaic_0001>
module attributes {stable_mosaic.version = 11 : i64} {
  func.func @_fc_emb_kernel(%arg0: memref<2x1xf32, #tpu.memory_space<vmem>>, %arg1: memref<1x4xf32, #tpu.memory_space<vmem>>, %arg2: memref<1x4xf32, #tpu.memory_space<vmem>>, %arg3: memref<4x4xf32, #tpu.memory_space<vmem>>, %arg4: memref<1x4xf32, #tpu.memory_space<vmem>>, %arg5: memref<2x4xf32, #tpu.memory_space<vmem>>) attributes {dimension_semantics = [], scalar_prefetch = 0 : i64, scratch_operands = 0 : i64, tpu.core_type = #tpu.core_type<tc>} {
    %c0 = arith.constant 0 : index
    %c0_0 = arith.constant 0 : index
    %0 = vector.load %arg0[%c0, %c0_0] : memref<2x1xf32, #tpu.memory_space<vmem>>, vector<2x1xf32>
    %c0_1 = arith.constant 0 : index
    %c0_2 = arith.constant 0 : index
    %1 = vector.load %arg1[%c0_1, %c0_2] : memref<1x4xf32, #tpu.memory_space<vmem>>, vector<1x4xf32>
    %2 = vector.broadcast %0 : vector<2x1xf32> to vector<2x4xf32>
    %3 = vector.broadcast %1 : vector<1x4xf32> to vector<2x4xf32>
    %4 = arith.mulf %2, %3 : vector<2x4xf32>
    %c0_3 = arith.constant 0 : index
    %c0_4 = arith.constant 0 : index
    %5 = vector.load %arg2[%c0_3, %c0_4] : memref<1x4xf32, #tpu.memory_space<vmem>>, vector<1x4xf32>
    %6 = vector.broadcast %5 : vector<1x4xf32> to vector<2x4xf32>
    %7 = arith.addf %4, %6 : vector<2x4xf32>
    %cst = arith.constant 5.000000e-01 : f32
    %8 = vector.broadcast %cst : f32 to vector<2x4xf32>
    %9 = arith.mulf %8, %7 : vector<2x4xf32>
    %cst_5 = arith.constant 4.471500e-02 : f32
    %10 = vector.broadcast %cst_5 : f32 to vector<2x4xf32>
    %11 = arith.mulf %10, %7 : vector<2x4xf32>
    %12 = arith.mulf %11, %7 : vector<2x4xf32>
    %13 = arith.mulf %12, %7 : vector<2x4xf32>
    %14 = arith.addf %7, %13 : vector<2x4xf32>
    %cst_6 = arith.constant 0.797884583 : f32
    %15 = vector.broadcast %cst_6 : f32 to vector<2x4xf32>
    %16 = arith.mulf %15, %14 : vector<2x4xf32>
    %17 = math.tanh %16 : vector<2x4xf32>
    %cst_7 = arith.constant 1.000000e+00 : f32
    %18 = vector.broadcast %cst_7 : f32 to vector<2x4xf32>
    %19 = arith.addf %18, %17 : vector<2x4xf32>
    %20 = arith.mulf %9, %19 : vector<2x4xf32>
    %21 = vector.shape_cast %20 : vector<2x4xf32> to vector<2x4x1xf32>
    %c0_8 = arith.constant 0 : index
    %c0_9 = arith.constant 0 : index
    %22 = vector.load %arg3[%c0_8, %c0_9] : memref<4x4xf32, #tpu.memory_space<vmem>>, vector<4x4xf32>
    %23 = vector.shape_cast %22 : vector<4x4xf32> to vector<1x4x4xf32>
    %24 = vector.broadcast %21 : vector<2x4x1xf32> to vector<2x4x4xf32>
    %25 = vector.broadcast %23 : vector<1x4x4xf32> to vector<2x4x4xf32>
    %26 = arith.mulf %24, %25 : vector<2x4x4xf32>
    %cst_10 = arith.constant dense<0.000000e+00> : vector<2x4xf32>
    %27 = vector.multi_reduction <add>, %26, %cst_10 [1] : vector<2x4x4xf32> to vector<2x4xf32>
    %c0_11 = arith.constant 0 : index
    %c0_12 = arith.constant 0 : index
    %28 = vector.load %arg4[%c0_11, %c0_12] : memref<1x4xf32, #tpu.memory_space<vmem>>, vector<1x4xf32>
    %29 = vector.broadcast %28 : vector<1x4xf32> to vector<2x4xf32>
    %30 = arith.addf %27, %29 : vector<2x4xf32>
    %c0_13 = arith.constant 0 : index
    %c0_14 = arith.constant 0 : index
    %31 = vector.load %arg5[%c0_13, %c0_14] : memref<2x4xf32, #tpu.memory_space<vmem>>, vector<2x4xf32>
    tpu.vector_store %arg5[%c0_13, %c0_14], %30 {strides = array<i32>} : memref<2x4xf32, #tpu.memory_space<vmem>>, vector<2x4xf32>,
    return
  }
}

</mosaic_0001>

<bundles_post_ra>
// kernel: tpu_custom_call.1
= control target key start
LH: loop header
LB: loop body
LE: loop exit
PB: predicated region body
PF: predicated region fallthrough
CT: control target
= control target key end

     0   :  { %v147_v1 = vmov 0   ;;  %s206_s0 = inlined_call_operand.vmem [shape: f32[2,1], index: 0, kind: input, shape index: {}]   ;;  %s207_s1 = inlined_call_operand.vmem [shape: f32[1,4], index: 1, kind: input, shape index: {}]   ;;  %s208_s2 = inlined_call_operand.vmem [shape: f32[1,4], index: 2, kind: input, shape index: {}]   ;;  %s209_s3 = inlined_call_operand.vmem [shape: f32[4,4], index: 3, kind: input, shape index: {}]   ;;  %s210_s4 = inlined_call_operand.vmem [shape: f32[1,4], index: 4, kind: input, shape index: {}]   ;;  %s211_s5 = inlined_call_operand.hbm [shape: f32[2,4], index: 5, kind: output, shape index: {}]  }
   0x1   :  { %v21_v0 = vld [vmem:[%s206_s0] sm:$0x3]  ;;  %120 = vset.pattern.permute.xlu0 %v147_v1 }
   0x2   :  { %10 = vsyncpa [#allocation3], 0  ;;  %25 = vperm.xlu0 %120, %v21_v0   ;;  %v115_v2 = vld [vmem:[%s207_s1] ss:$0 sm:$0xff]  ;;  %v52_v12 = vlaneseq  ;;  %vm69_vm0 = vcmask 27648   ;;  %vm96_vm1 = vcmask 1041409  }
   0x3   :  { %v116_v3 = vld [vmem:[%s208_s2] ss:$0 sm:$0xff]  ;;  %vm99_vm2 = vcmask 25600  }
   0x4   :  { %v53_v13 = vshrl.u32 %v52_v12, 7  ;;  %v66_v22 = vld [vmem:[%s209_s3] sm:$0xf]  ;;  %s148_s3 = smov [#allocation2]  }
   0x5   :  { %v117_v39 = vld [vmem:[%s210_s4] ss:$0 sm:$0xff]  ;;  %s107_s25 = sshll.u32 %s148_s3, 4  ;;  %s108_s25 = int_to_ptr.vmem [resolvable:$true] %s107_s25 }
   0x6   :  { %v61_v17 = vsub.s32 1, %v53_v13  ;;  %v54_v18 = vsub.s32 0, %v53_v13  ;;  %s123_s26 = scalar_lea.vmem %s108_s25, 32  ;;  %p128_p1 = scmp.lt.s32.totalorder %s108_s25, %s108_s25 }
   0x7   :  { %p124_p0 = scmp.ne.s32.totalorder %s108_s25, %s123_s26  ;;  %p129_p2 = scmp.lt.s32.totalorder %s123_s26, %s123_s26 }
   0x9   :  { %p130_p3 = por %p129_p2, %p128_p1 }
   0xb   :  { %p131_p4 = pnand %p130_p3, %p124_p0 }
  0x81   :  { %v26_v4 = vpop.permute.xlu0 %25 }
  0x82   :  { %v34_v5 = vmul.f32 %v115_v2, %v26_v4 }
  0x84   :  { %v42_v6 = vadd.f32 %v116_v3, %v34_v5 }
  0x86   :  { %v44_v7 = vmul.f32 0.044715, %v42_v6  ;;  %v43_v15 = vmul.f32 0.5, %v42_v6 }
  0x88   :  { %v45_v8 = vmul.f32 %v44_v7, %v42_v6 }
  0x8a   :  { %v46_v9 = vmul.f32 %v45_v8, %v42_v6 }
  0x8c   :  { %v47_v10 = vadd.f32 %v46_v9, %v42_v6 }
  0x8e   :  { %v48_v11 = vmul.f32 0.7978846, %v47_v10 }
  0x90   :  { %121 = vtanh.f32 %v48_v11 }
  0x9a   :  { %v122_v14 = vpop.eup %121 }
  0x9b   :  { %v50_v16 = vadd.f32 1.0, %v122_v14 }
  0x9d   :  { %v51_v19 = vmul.f32 %v50_v16, %v43_v15 }
  0x9f   :  { %v62_v20 = vrot.slane %v51_v19, %v61_v17  ;;  %v55_v21 = vrot.slane %v51_v19, %v54_v18 }
  0xa1   :  { %64 = vbcast.lane.b32.xlu0 %v62_v20, 256  ;;  %57 = vbcast.lane.b32.xlu1 %v55_v21, 256 }
 0x113   :  { %v65_v23 = vpop.permute.xlu0 %64  ;;  %v58_v24 = vpop.permute.xlu1 %57 }
 0x114   :  { %v68_v25 = vmul.f32 %v66_v22, %v65_v23  ;;  %v67_v26 = vmul.f32 %v66_v22, %v58_v24 }
 0x116   :  { %v77_v27 = vsel %vm69_vm0, %v68_v25, 0.0  ;;  %v70_v28 = vsel %vm69_vm0, %v67_v26, 0.0 }
 0x117   :  { %v78_v29 = vrot.slane %v77_v27, 4  ;;  %v71_v30 = vrot.slane %v70_v28, 4 }
 0x119   :  { %v79_v31 = vadd.f32 %v78_v29, %v77_v27  ;;  %v72_v32 = vadd.f32 %v71_v30, %v70_v28 }
 0x11b   :  { %v80_v33 = vrot.slane %v79_v31, 2  ;;  %v73_v34 = vrot.slane %v72_v32, 2 }
 0x11d   :  { %v81_v35 = vadd.f32 %v80_v33, %v79_v31  ;;  %v74_v36 = vadd.f32 %v73_v34, %v72_v32 }
 0x11f   :  { %v82_v37 = vrot.slane %v81_v35, 1  ;;  %v75_v38 = vrot.slane %v74_v36, 1 }
 0x121   :  { %v83_v40 = vadd.f32 %v82_v37, %v81_v35  ;;  %v76_v41 = vadd.f32 %v75_v38, %v74_v36 }
 0x123   :  { %v92_v42 = vadd.f32 %v117_v39, %v83_v40  ;;  %v91_v43 = vadd.f32 %v117_v39, %v76_v41 }
 0x125   :  { %v95_v44 = vrot.slane %v92_v42, 7 }
 0x127   :  { %v97_v45 = vsel %vm96_vm1, %v95_v44, %v91_v43 }
 0x128   :  { %100 = vst.msk [vmem:[#allocation2] sm:$0x3] %vm99_vm2, %v97_v45 }
 0x129   :  { %134 = shalt.err (!%p131_p4)
}
 0x12a   :  { %s135_s28 = scalar_lea.hbm %s211_s5, 32 }
 0x12b   :  { %p136_p5 = scmp.ne.s32.totalorder %s211_s5, %s135_s28  ;;  %p139_p6 = scmp.lt.u32.totalorder %s135_s28, %s211_s5 }
 0x12d   :  { %p141_p7 = pnand %p139_p6, %p136_p5 }
 0x12f   :  { %144 = shalt.err (!%p141_p7)
}
 0x130   :  { %110 = dma.vmem_to_hbm [thread:$0]  %s108_s25, 32, %s211_s5, [#allocation3]  }
 0x131   :  { %145 = dma.done.wait [#allocation3], 32  }
 0x132   :  { %146 = vsyncadd [#allocation3], 4294967264 }
 0x133   :  { %114 = vsyncpa [#allocation3], 1 }

</bundles_post_ra>
